<compile_context>
chip_gen: v6e
topology: v6e:2x2x1
jax: 0.10.0
libtpu: 0.0.40
codegen_flags: <defaults>
</compile_context>

<pallas_src>
import jax
import jax.numpy as jnp
from jax.experimental import pallas as pl
from jax.experimental.pallas import tpu as pltpu

_SELU_ALPHA = 1.6732632423543772848170429916717
_SELU_SCALE = 1.0507009873554804934193349852946


def _selu(x):
    # full SELU (used only by the plain-JAX reference)
    return _SELU_SCALE * jnp.where(x > 0.0, x, _SELU_ALPHA * (jnp.exp(x) - 1.0))


def _selu_unscaled(x):
    # SELU without the outer scale; the scale is folded into the next layer's
    # weights in the wrapper.
    return jnp.where(x > 0.0, x, _SELU_ALPHA * (jnp.exp(x) - 1.0))


def mlp_kernel(x_ref,
               w1_ref, b1_ref,
               w2_ref, b2_ref,
               w3_ref, b3_ref,
               w4_ref, b4_ref,
               out_ref):
    # Transposed layout: activations are (features, TILE_B),
    # weights are (out_features, in_features), biases are (out_features, 1).
    x = x_ref[...]                       # (in_dim, TILE_B), in_dim is tiny (2/3)
    w1 = w1_ref[...]                     # (64, in_dim)

    # Layer 1: K = in_dim is a degenerate MXU contraction -> do it on the VPU
    # as `in_dim` broadcast multiply-adds (static, tiny trip-count).
    h = b1_ref[...] + w1[:, 0:1] * x[0:1, :]
    for k in range(1, w1.shape[1]):
        h = h + w1[:, k:k + 1] * x[k:k + 1, :]
    h = _selu_unscaled(h)                # scale folded into w2

    # Layers 2/3: (64,64) @ (64, TILE_B) on the MXU; N = TILE_B is the big axis.
    h = jnp.dot(w2_ref[...], h, preferred_element_type=jnp.float32) + b2_ref[...]
    h = _selu_unscaled(h)                # scale folded into w3
    h = jnp.dot(w3_ref[...], h, preferred_element_type=jnp.float32) + b3_ref[...]
    h = _selu_unscaled(h)                # scale folded into w4

    # Output layer.
    y = jnp.dot(w4_ref[...], h, preferred_element_type=jnp.float32) + b4_ref[...]
    out_ref[...] = y.astype(out_ref.dtype)


def mlp_forward(x, params, *, tile_b=4096):
    """x: (B, in_dim) f32. params: list of (W (out,in), b (out,)), torch.nn.Linear style."""
    (w1, b1), (w2, b2), (w3, b3), (w4, b4) = params
    B, in_dim = x.shape
    out_dim = w4.shape[0]

    # --- wrapper-side constant folding (SELU scale -> next layer's weights) ---
    w1c = w1.astype(jnp.float32)
    w2c = (_SELU_SCALE * w2).astype(jnp.float32)
    w3c = (_SELU_SCALE * w3).astype(jnp.float32)
    w4c = (_SELU_SCALE * w4).astype(jnp.float32)
    b1c = b1.reshape(-1, 1).astype(jnp.float32)
    b2c = b2.reshape(-1, 1).astype(jnp.float32)
    b3c = b3.reshape(-1, 1).astype(jnp.float32)
    b4c = b4.reshape(-1, 1).astype(jnp.float32)

    # --- layout plumbing: batch on lanes, pad batch to a multiple of TILE_B ---
    tile_b = max(128, min(int(tile_b), pl.cdiv(B, 128) * 128))
    b_pad = pl.cdiv(B, tile_b) * tile_b
    xt = jnp.zeros((in_dim, b_pad), jnp.float32).at[:, :B].set(x.T)

    def const_spec(shape):
        # weights/biases: full-array block, same block every grid step -> resident
        return pl.BlockSpec(shape, lambda i: (0, 0))

    yt = pl.pallas_call(
        mlp_kernel,
        out_shape=jax.ShapeDtypeStruct((out_dim, b_pad), jnp.float32),
        grid=(b_pad // tile_b,),
        in_specs=[
            pl.BlockSpec((in_dim, tile_b), lambda i: (0, i)),   # streamed x tile
            const_spec(w1c.shape), const_spec(b1c.shape),
            const_spec(w2c.shape), const_spec(b2c.shape),
            const_spec(w3c.shape), const_spec(b3c.shape),
            const_spec(w4c.shape), const_spec(b4c.shape),
        ],
        out_specs=pl.BlockSpec((out_dim, tile_b), lambda i: (0, i)),
        compiler_params=pltpu.CompilerParams(
            dimension_semantics=("parallel",)),
    )(xt, w1c, b1c, w2c, b2c, w3c, b3c, w4c, b4c)

    return yt[:, :B].T


def init_params(key, dim=2, out_dim=None, w=64, time_varying=False):
    """torch.nn.Linear-style params: W is (out_features, in_features), b is (out_features,)."""
    if out_dim is None:
        out_dim = dim
    in_dim = dim + (1 if time_varying else 0)
    dims = [(in_dim, w), (w, w), (w, w), (w, out_dim)]
    params = []
    for (fan_in, fan_out) in dims:
        key, kw, kb = jax.random.split(key, 3)
        bound = 1.0 / float(fan_in) ** 0.5
        W = jax.random.uniform(kw, (fan_out, fan_in), jnp.float32, -bound, bound)
        b = jax.random.uniform(kb, (fan_out,), jnp.float32, -bound, bound)
        params.append((W, b))
    return params


if __name__ == "__main__":
    key = jax.random.PRNGKey(0)
    kx, kp = jax.random.split(key)

    dim = 2
    batch = 8
    params = init_params(kp, dim=dim, out_dim=None, w=64, time_varying=False)
    x = jax.random.normal(kx, (batch, dim), jnp.float32)

    y = jax.jit(mlp_forward)(x, params)
    y = jax.block_until_ready(y)

    # plain-JAX reference mirroring torch.nn.Linear semantics (y = x @ W.T + b)
    ref = x
    for i, (W, b) in enumerate(params):
        ref = ref @ W.T + b
        if i < 3:
            ref = _selu(ref)

    assert y.shape == (batch, dim)
    assert jnp.allclose(y, ref, atol=1e-4, rtol=1e-4), float(jnp.max(jnp.abs(y - ref)))

    print("KERNEL_OK")
</pallas_src>

<mosaic_0001>
module attributes {stable_mosaic.version = 11 : i64} {
  func.func @mlp_kernel(%arg0: i32, %arg1: memref<2x128xf32, #tpu.memory_space<vmem>>, %arg2: memref<64x2xf32, #tpu.memory_space<vmem>>, %arg3: memref<64x1xf32, #tpu.memory_space<vmem>>, %arg4: memref<64x64xf32, #tpu.memory_space<vmem>>, %arg5: memref<64x1xf32, #tpu.memory_space<vmem>>, %arg6: memref<64x64xf32, #tpu.memory_space<vmem>>, %arg7: memref<64x1xf32, #tpu.memory_space<vmem>>, %arg8: memref<2x64xf32, #tpu.memory_space<vmem>>, %arg9: memref<2x1xf32, #tpu.memory_space<vmem>>, %arg10: memref<2x128xf32, #tpu.memory_space<vmem>>) attributes {dimension_semantics = [#tpu.dimension_semantics<parallel>], iteration_bounds = array<i64: 1>, scalar_prefetch = 0 : i64, scratch_operands = 0 : i64, tpu.core_type = #tpu.core_type<tc>, window_params = [{transform_indices = @transform_0, window_bounds = array<i64: 2, 128>}, {pipeline_mode = #tpu.pipeline_mode<synchronous>, transform_indices = @transform_1, window_bounds = array<i64: 64, 2>}, {pipeline_mode = #tpu.pipeline_mode<synchronous>, transform_indices = @transform_2, window_bounds = array<i64: 64, 1>}, {pipeline_mode = #tpu.pipeline_mode<synchronous>, transform_indices = @transform_3, window_bounds = array<i64: 64, 64>}, {pipeline_mode = #tpu.pipeline_mode<synchronous>, transform_indices = @transform_4, window_bounds = array<i64: 64, 1>}, {pipeline_mode = #tpu.pipeline_mode<synchronous>, transform_indices = @transform_5, window_bounds = array<i64: 64, 64>}, {pipeline_mode = #tpu.pipeline_mode<synchronous>, transform_indices = @transform_6, window_bounds = array<i64: 64, 1>}, {pipeline_mode = #tpu.pipeline_mode<synchronous>, transform_indices = @transform_7, window_bounds = array<i64: 2, 64>}, {pipeline_mode = #tpu.pipeline_mode<synchronous>, transform_indices = @transform_8, window_bounds = array<i64: 2, 1>}, {transform_indices = @transform_9, window_bounds = array<i64: 2, 128>}]} {
    %c0 = arith.constant 0 : index
    %c0_0 = arith.constant 0 : index
    %0 = vector.load %arg1[%c0, %c0_0] : memref<2x128xf32, #tpu.memory_space<vmem>>, vector<2x128xf32>
    %c0_1 = arith.constant 0 : index
    %c0_2 = arith.constant 0 : index
    %1 = vector.load %arg2[%c0_1, %c0_2] : memref<64x2xf32, #tpu.memory_space<vmem>>, vector<64x2xf32>
    %c0_3 = arith.constant 0 : index
    %c0_4 = arith.constant 0 : index
    %2 = vector.load %arg3[%c0_3, %c0_4] : memref<64x1xf32, #tpu.memory_space<vmem>>, vector<64x1xf32>
    %3 = vector.extract_strided_slice %1 {offsets = [0, 0], sizes = [64, 1], strides = [1, 1]} : vector<64x2xf32> to vector<64x1xf32>
    %4 = vector.extract_strided_slice %0 {offsets = [0, 0], sizes = [1, 128], strides = [1, 1]} : vector<2x128xf32> to vector<1x128xf32>
    %5 = vector.broadcast %3 : vector<64x1xf32> to vector<64x128xf32>
    %6 = vector.broadcast %4 : vector<1x128xf32> to vector<64x128xf32>
    %7 = arith.mulf %5, %6 : vector<64x128xf32>
    %8 = vector.broadcast %2 : vector<64x1xf32> to vector<64x128xf32>
    %9 = arith.addf %8, %7 : vector<64x128xf32>
    %10 = vector.extract_strided_slice %1 {offsets = [0, 1], sizes = [64, 1], strides = [1, 1]} : vector<64x2xf32> to vector<64x1xf32>
    %11 = vector.extract_strided_slice %0 {offsets = [1, 0], sizes = [1, 128], strides = [1, 1]} : vector<2x128xf32> to vector<1x128xf32>
    %12 = vector.broadcast %10 : vector<64x1xf32> to vector<64x128xf32>
    %13 = vector.broadcast %11 : vector<1x128xf32> to vector<64x128xf32>
    %14 = arith.mulf %12, %13 : vector<64x128xf32>
    %15 = arith.addf %9, %14 : vector<64x128xf32>
    %cst = arith.constant 0.000000e+00 : f32
    %16 = vector.broadcast %cst : f32 to vector<64x128xf32>
    %17 = arith.cmpf ogt, %15, %16 : vector<64x128xf32>
    %18 = math.exp %15 : vector<64x128xf32>
    %cst_5 = arith.constant 1.000000e+00 : f32
    %19 = vector.broadcast %cst_5 : f32 to vector<64x128xf32>
    %20 = arith.subf %18, %19 : vector<64x128xf32>
    %cst_6 = arith.constant 1.67326319 : f32
    %21 = vector.broadcast %cst_6 : f32 to vector<64x128xf32>
    %22 = arith.mulf %21, %20 : vector<64x128xf32>
    %23 = arith.select %17, %15, %22 : vector<64x128xi1>, vector<64x128xf32>
    %c0_7 = arith.constant 0 : index
    %c0_8 = arith.constant 0 : index
    %24 = vector.load %arg4[%c0_7, %c0_8] : memref<64x64xf32, #tpu.memory_space<vmem>>, vector<64x64xf32>
    %cst_9 = arith.constant dense<0.000000e+00> : vector<64x128xf32>
    %25 = tpu.matmul %24, %23, %cst_9 {dimension_numbers = #tpu.dot_dimension_numbers<[1], [0], [0], [1], [0, 0, 1, 1], [], []>} : vector<64x64xf32>, vector<64x128xf32>, vector<64x128xf32> -> vector<64x128xf32>
    %c0_10 = arith.constant 0 : index
    %c0_11 = arith.constant 0 : index
    %26 = vector.load %arg5[%c0_10, %c0_11] : memref<64x1xf32, #tpu.memory_space<vmem>>, vector<64x1xf32>
    %27 = vector.broadcast %26 : vector<64x1xf32> to vector<64x128xf32>
    %28 = arith.addf %25, %27 : vector<64x128xf32>
    %cst_12 = arith.constant 0.000000e+00 : f32
    %29 = vector.broadcast %cst_12 : f32 to vector<64x128xf32>
    %30 = arith.cmpf ogt, %28, %29 : vector<64x128xf32>
    %31 = math.exp %28 : vector<64x128xf32>
    %cst_13 = arith.constant 1.000000e+00 : f32
    %32 = vector.broadcast %cst_13 : f32 to vector<64x128xf32>
    %33 = arith.subf %31, %32 : vector<64x128xf32>
    %cst_14 = arith.constant 1.67326319 : f32
    %34 = vector.broadcast %cst_14 : f32 to vector<64x128xf32>
    %35 = arith.mulf %34, %33 : vector<64x128xf32>
    %36 = arith.select %30, %28, %35 : vector<64x128xi1>, vector<64x128xf32>
    %c0_15 = arith.constant 0 : index
    %c0_16 = arith.constant 0 : index
    %37 = vector.load %arg6[%c0_15, %c0_16] : memref<64x64xf32, #tpu.memory_space<vmem>>, vector<64x64xf32>
    %cst_17 = arith.constant dense<0.000000e+00> : vector<64x128xf32>
    %38 = tpu.matmul %37, %36, %cst_17 {dimension_numbers = #tpu.dot_dimension_numbers<[1], [0], [0], [1], [0, 0, 1, 1], [], []>} : vector<64x64xf32>, vector<64x128xf32>, vector<64x128xf32> -> vector<64x128xf32>
    %c0_18 = arith.constant 0 : index
    %c0_19 = arith.constant 0 : index
    %39 = vector.load %arg7[%c0_18, %c0_19] : memref<64x1xf32, #tpu.memory_space<vmem>>, vector<64x1xf32>
    %40 = vector.broadcast %39 : vector<64x1xf32> to vector<64x128xf32>
    %41 = arith.addf %38, %40 : vector<64x128xf32>
    %cst_20 = arith.constant 0.000000e+00 : f32
    %42 = vector.broadcast %cst_20 : f32 to vector<64x128xf32>
    %43 = arith.cmpf ogt, %41, %42 : vector<64x128xf32>
    %44 = math.exp %41 : vector<64x128xf32>
    %cst_21 = arith.constant 1.000000e+00 : f32
    %45 = vector.broadcast %cst_21 : f32 to vector<64x128xf32>
    %46 = arith.subf %44, %45 : vector<64x128xf32>
    %cst_22 = arith.constant 1.67326319 : f32
    %47 = vector.broadcast %cst_22 : f32 to vector<64x128xf32>
    %48 = arith.mulf %47, %46 : vector<64x128xf32>
    %49 = arith.select %43, %41, %48 : vector<64x128xi1>, vector<64x128xf32>
    %c0_23 = arith.constant 0 : index
    %c0_24 = arith.constant 0 : index
    %50 = vector.load %arg8[%c0_23, %c0_24] : memref<2x64xf32, #tpu.memory_space<vmem>>, vector<2x64xf32>
    %cst_25 = arith.constant dense<0.000000e+00> : vector<2x128xf32>
    %51 = tpu.matmul %50, %49, %cst_25 {dimension_numbers = #tpu.dot_dimension_numbers<[1], [0], [0], [1], [0, 0, 1, 1], [], []>} : vector<2x64xf32>, vector<64x128xf32>, vector<2x128xf32> -> vector<2x128xf32>
    %c0_26 = arith.constant 0 : index
    %c0_27 = arith.constant 0 : index
    %52 = vector.load %arg9[%c0_26, %c0_27] : memref<2x1xf32, #tpu.memory_space<vmem>>, vector<2x1xf32>
    %53 = vector.broadcast %52 : vector<2x1xf32> to vector<2x128xf32>
    %54 = arith.addf %51, %53 : vector<2x128xf32>
    %c0_28 = arith.constant 0 : index
    %c0_29 = arith.constant 0 : index
    %55 = vector.load %arg10[%c0_28, %c0_29] : memref<2x128xf32, #tpu.memory_space<vmem>>, vector<2x128xf32>
    tpu.vector_store %arg10[%c0_28, %c0_29], %54 {strides = array<i32>} : memref<2x128xf32, #tpu.memory_space<vmem>>, vector<2x128xf32>,
    return
  }
  func.func @transform_0(%arg0: i32) -> (i32, i32) {
    %c0_i32 = arith.constant 0 : i32
    %c0_i32_0 = arith.constant 0 : i32
    return %c0_i32, %arg0 : i32, i32
  }
  func.func @transform_1(%arg0: i32) -> (i32, i32) {
    %c0_i32 = arith.constant 0 : i32
    %c0_i32_0 = arith.constant 0 : i32
    %c0_i32_1 = arith.constant 0 : i32
    return %c0_i32, %c0_i32_0 : i32, i32
  }
  func.func @transform_2(%arg0: i32) -> (i32, i32) {
    %c0_i32 = arith.constant 0 : i32
    %c0_i32_0 = arith.constant 0 : i32
    %c0_i32_1 = arith.constant 0 : i32
    return %c0_i32, %c0_i32_0 : i32, i32
  }
  func.func @transform_3(%arg0: i32) -> (i32, i32) {
    %c0_i32 = arith.constant 0 : i32
    %c0_i32_0 = arith.constant 0 : i32
    %c0_i32_1 = arith.constant 0 : i32
    return %c0_i32, %c0_i32_0 : i32, i32
  }
  func.func @transform_4(%arg0: i32) -> (i32, i32) {
    %c0_i32 = arith.constant 0 : i32
    %c0_i32_0 = arith.constant 0 : i32
    %c0_i32_1 = arith.constant 0 : i32
    return %c0_i32, %c0_i32_0 : i32, i32
  }
  func.func @transform_5(%arg0: i32) -> (i32, i32) {
    %c0_i32 = arith.constant 0 : i32
    %c0_i32_0 = arith.constant 0 : i32
    %c0_i32_1 = arith.constant 0 : i32
    return %c0_i32, %c0_i32_0 : i32, i32
  }
  func.func @transform_6(%arg0: i32) -> (i32, i32) {
    %c0_i32 = arith.constant 0 : i32
    %c0_i32_0 = arith.constant 0 : i32
    %c0_i32_1 = arith.constant 0 : i32
    return %c0_i32, %c0_i32_0 : i32, i32
  }
  func.func @transform_7(%arg0: i32) -> (i32, i32) {
    %c0_i32 = arith.constant 0 : i32
    %c0_i32_0 = arith.constant 0 : i32
    %c0_i32_1 = arith.constant 0 : i32
    return %c0_i32, %c0_i32_0 : i32, i32
  }
  func.func @transform_8(%arg0: i32) -> (i32, i32) {
    %c0_i32 = arith.constant 0 : i32
    %c0_i32_0 = arith.constant 0 : i32
    %c0_i32_1 = arith.constant 0 : i32
    return %c0_i32, %c0_i32_0 : i32, i32
  }
  func.func @transform_9(%arg0: i32) -> (i32, i32) {
    %c0_i32 = arith.constant 0 : i32
    %c0_i32_0 = arith.constant 0 : i32
    return %c0_i32, %arg0 : i32, i32
  }
}

</mosaic_0001>

<bundles_post_ra>
// kernel: mlp_forward.1
= control target key start
LH: loop header
LB: loop body
LE: loop exit
PB: predicated region body
PF: predicated region fallthrough
CT: control target
= control target key end

     0   :  { %v1020_v0 = vmov 0   ;;  %v1021_v4 = vmov 1   ;;  %vm305_vm0 = vcmask 523264   ;;  %v89_v34 = vlaneseq  ;;  %s1316_s2 = inlined_call_operand.vmem [shape: f32[64,1], index: 2, kind: input, shape index: {}]   ;;  %s1317_s1 = inlined_call_operand.vmem [shape: f32[64,2], index: 1, kind: input, shape index: {}]   ;;  %s1318_s4 = inlined_call_operand.vmem [shape: f32[64,1], index: 4, kind: input, shape index: {}]   ;;  %s1319_s6 = inlined_call_operand.vmem [shape: f32[64,1], index: 6, kind: input, shape index: {}]   ;;  %s1320_s3 = inlined_call_operand.vmem [shape: f32[64,64], index: 3, kind: input, shape index: {}]   ;;  %s1321_s8 = inlined_call_operand.vmem [shape: f32[2,1], index: 8, kind: input, shape index: {}]   ;;  %s1322_s0 = inlined_call_operand.vmem [shape: f32[2,128], index: 0, kind: input, shape index: {}]   ;;  %s1323_s5 = inlined_call_operand.vmem [shape: f32[64,64], index: 5, kind: input, shape index: {}]   ;;  %s1324_s7 = inlined_call_operand.vmem [shape: f32[2,64], index: 7, kind: input, shape index: {}]   ;;  %s1325_s9 = inlined_call_operand.vmem [shape: f32[2,128], index: 9, kind: output, shape index: {}]  }
   0x1   :  { %963 = vset.pattern.permute.xlu1 %v1020_v0  ;;  %962 = vset.pattern.permute.xlu0 %v1020_v0  ;;  %v48_v1 = vld [vmem:[%s1316_s2 + $0x38] sm:$0xff]  ;;  %v39_v3 = vld [vmem:[%s1317_s1 + $0x30] sm:$0xff]  ;;  %v38_v5 = vld [vmem:[%s1317_s1 + $0x28] sm:$0xff] }
   0x2   :  { %v40_v2 = vld [vmem:[%s1317_s1 + $0x38] sm:$0xff]  ;;  %138 = vperm.xlu1 %963, %v48_v1   ;;  %v47_v6 = vld [vmem:[%s1316_s2 + $0x30] sm:$0xff]  ;;  %v45_v7 = vld [vmem:[%s1316_s2 + $0x20] sm:$0xff]  ;;  %v90_v36 = vshrl.u32 %v89_v34, 7 }
   0x3   :  { %86 = vperm.xlu0 %962, %v40_v2   ;;  %v37_v8 = vld [vmem:[%s1317_s1 + $0x20] sm:$0xff]  ;;  %v44_v9 = vld [vmem:[%s1316_s2 + $0x18] sm:$0xff]  ;;  %v46_v10 = vld [vmem:[%s1316_s2 + $0x28] sm:$0xff] }
   0x4   :  { %v34_v11 = vld [vmem:[%s1317_s1 + $0x8] sm:$0xff]  ;;  %v36_v12 = vld [vmem:[%s1317_s1 + $0x18] sm:$0xff]  ;;  %v35_v13 = vld [vmem:[%s1317_s1 + $0x10] sm:$0xff]  ;;  %v91_v38 = vsub.s32 0, %v90_v36  ;;  %v183_v41 = vsub.s32 1, %v90_v36 }
   0x5   :  { %v33_v14 = vld [vmem:[%s1317_s1] sm:$0xff]  ;;  %v43_v15 = vld [vmem:[%s1316_s2 + $0x10] sm:$0xff]  ;;  %v42_v16 = vld [vmem:[%s1316_s2 + $0x8] sm:$0xff] }
   0x6   :  { %964 = vset.pattern.permute.xlu1 %v1021_v4  ;;  %v41_v17 = vld [vmem:[%s1316_s2] sm:$0xff]  ;;  %v264_v18 = vld [vmem:[%s1318_s4 + $0x38] sm:$0xff]  ;;  %v262_v19 = vld [vmem:[%s1318_s4 + $0x28] sm:$0xff] }
   0x7   :  { %81 = vperm.xlu0 %962, %v39_v3   ;;  %178 = vperm.xlu1 %964, %v40_v2   ;;  %v261_v20 = vld [vmem:[%s1318_s4 + $0x20] sm:$0xff]  ;;  %v259_v21 = vld [vmem:[%s1318_s4 + $0x10] sm:$0xff]  ;;  %v260_v29 = vld [vmem:[%s1318_s4 + $0x18] sm:$0xff] }
   0x8   :  { %v257_v22 = vld [vmem:[%s1318_s4] sm:$0xff]  ;;  %v497_v23 = vld [vmem:[%s1319_s6 + $0x30] sm:$0xff]  ;;  %v258_v30 = vld [vmem:[%s1318_s4 + $0x8] sm:$0xff] }
   0x9   :  { %v249_v24 = vld [vmem:[%s1320_s3] sm:$0xff]  ;;  %v493_v26 = vld [vmem:[%s1319_s6 + $0x10] sm:$0xff]  ;;  %v498_v31 = vld [vmem:[%s1319_s6 + $0x38] sm:$0xff] }
   0xa   :  { %899 = vmatprep.mubr.msk.f32.mxu0 %vm305_vm0, %v249_v24  ;;  %v495_v25 = vld [vmem:[%s1319_s6 + $0x20] sm:$0xff]  ;;  %v263_v28 = vld [vmem:[%s1318_s4 + $0x30] sm:$0xff]  ;;  %v496_v32 = vld [vmem:[%s1319_s6 + $0x28] sm:$0xff] }
   0xb   :  { %76 = vperm.xlu0 %962, %v38_v5   ;;  %965 = vset.pattern.permute.xlu1 %v1020_v0  ;;  %v491_v27 = vld [vmem:[%s1319_s6] sm:$0xff]  ;;  %v494_v33 = vld [vmem:[%s1319_s6 + $0x18] sm:$0xff]  ;;  %v492_v35 = vld [vmem:[%s1319_s6 + $0x8] sm:$0xff] }
   0xc   :  { %133 = vperm.xlu1 %965, %v47_v6   ;;  %v717_v37 = vld [vmem:[%s1321_s8] sm:$0x3] }
   0xd   :  { %v32_v39 = vld [vmem:[%s1322_s0] sm:$0x3] }
   0xe   :  { %v1180_v40 = vrot.slane %v32_v39, %v91_v38  ;;  %v1183_v45 = vrot.slane %v32_v39, %v183_v41 }
   0xf   :  { %123 = vperm.xlu0 %962, %v45_v7  }
  0x10   :  { %71 = vperm.xlu1 %965, %v37_v8  }
  0x13   :  { %118 = vperm.xlu0 %962, %v44_v9  }
  0x14   :  { %128 = vperm.xlu1 %965, %v46_v10  }
  0x17   :  { %56 = vperm.xlu0 %962, %v34_v11  }
  0x18   :  { %66 = vperm.xlu1 %965, %v36_v12  }
  0x1b   :  { %969 = vset.pattern.permute.xlu0 %v1021_v4 }
  0x1c   :  { %174 = vperm.xlu0 %969, %v39_v3   ;;  %966 = vset.pattern.permute.xlu1 %v1021_v4 }
  0x1d   :  { %166 = vperm.xlu1 %966, %v37_v8  }
  0x20   :  { %170 = vperm.xlu0 %969, %v38_v5  }
  0x21   :  { %967 = vset.pattern.permute.xlu1 %v1020_v0 }
  0x22   :  { %61 = vperm.xlu1 %967, %v35_v13  }
  0x24   :  { %158 = vperm.xlu0 %969, %v35_v13  }
  0x26   :  { %968 = vset.pattern.permute.xlu1 %v1021_v4 }
  0x27   :  { %162 = vperm.xlu1 %968, %v36_v12  }
  0x28   :  { %154 = vperm.xlu0 %969, %v34_v11  }
  0x2b   :  { %970 = vset.pattern.permute.xlu1 %v1020_v0 }
  0x2c   :  { %150 = vperm.xlu0 %969, %v33_v14   ;;  %113 = vperm.xlu1 %970, %v43_v15  }
  0x30   :  { %971 = vset.pattern.permute.xlu0 %v1020_v0  ;;  %51 = vperm.xlu1 %970, %v33_v14  }
  0x31   :  { %297 = vperm.xlu0 %971, %v263_v28  }
  0x34   :  { %108 = vperm.xlu1 %970, %v42_v16  }
  0x35   :  { %282 = vperm.xlu0 %971, %v260_v29  }
  0x38   :  { %103 = vperm.xlu1 %970, %v41_v17  }
  0x39   :  { %272 = vperm.xlu0 %971, %v258_v30  }
  0x3c   :  { %302 = vperm.xlu1 %970, %v264_v18  }
  0x3d   :  { %536 = vperm.xlu0 %971, %v498_v31  }
  0x40   :  { %292 = vperm.xlu1 %970, %v262_v19  }
  0x41   :  { %526 = vperm.xlu0 %971, %v496_v32  }
  0x44   :  { %287 = vperm.xlu1 %970, %v261_v20  }
  0x45   :  { %516 = vperm.xlu0 %971, %v494_v33  }
  0x48   :  { %277 = vperm.xlu1 %970, %v259_v21  }
  0x49   :  { %506 = vperm.xlu0 %971, %v492_v35  }
  0x4c   :  { %267 = vperm.xlu1 %970, %v257_v22  }
  0x4d   :  { %720 = vperm.xlu0 %971, %v717_v37  }
  0x50   :  { %531 = vperm.xlu1 %970, %v497_v23  }
  0x54   :  { %521 = vperm.xlu1 %970, %v495_v25  }
  0x58   :  { %511 = vperm.xlu1 %970, %v493_v26  }
  0x5c   :  { %501 = vperm.xlu1 %970, %v491_v27  }
  0x7d   :  { %v139_v42 = vpop.permute.xlu1 %138 }
  0x7e   :  { %v87_v43 = vpop.permute.xlu0 %86 }
  0x7f   :  { %v100_v44 = vmul.f32 %v1180_v40, %v87_v43 }
  0x81   :  { %v148_v48 = vadd.f32 %v139_v42, %v100_v44 }
  0x82   :  { %v82_v46 = vpop.permute.xlu0 %81  ;;  %v179_v47 = vpop.permute.xlu1 %178 }
  0x83   :  { %v192_v49 = vmul.f32 %v1183_v45, %v179_v47  ;;  %v99_v59 = vmul.f32 %v1180_v40, %v82_v46 }
  0x85   :  { %v200_v50 = vadd.f32 %v192_v49, %v148_v48 }
  0x86   :  { %v77_v51 = vpop.permute.xlu0 %76 }
  0x87   :  { %v223_v52 = vmul.f32 1.442695, %v200_v50  ;;  %v134_v53 = vpop.permute.xlu1 %133  ;;  %v98_v3 = vmul.f32 %v1180_v40, %v77_v51  ;;  %vm208_vm1 = vcmp.gt.f32.partialorder %v200_v50, 0.0 }
  0x88   :  { %v147_v0 = vadd.f32 %v134_v53, %v99_v59 }
  0x89   :  { %972 = vpow2.f32 %v223_v52 }
  0x8a   :  { %v124_v54 = vpop.permute.xlu0 %123 }
  0x8b   :  { %v72_v55 = vpop.permute.xlu1 %71 }
  0x8c   :  { %v97_v61 = vmul.f32 %v1180_v40, %v72_v55 }
  0x8e   :  { %v119_v56 = vpop.permute.xlu0 %118  ;;  %v145_v5 = vadd.f32 %v124_v54, %v97_v61 }
  0x8f   :  { %v129_v57 = vpop.permute.xlu1 %128 }
  0x90   :  { %v146_v9 = vadd.f32 %v129_v57, %v98_v3 }
  0x92   :  { %v57_v58 = vpop.permute.xlu0 %56 }
  0x93   :  { %v67_v60 = vpop.permute.xlu1 %66  ;;  %v94_v41 = vmul.f32 %v1180_v40, %v57_v58 }
  0x94   :  { %v96_v18 = vmul.f32 %v1180_v40, %v67_v60 }
  0x96   :  { %v973_v62 = vpop.eup %972  ;;  %v144_v21 = vadd.f32 %v119_v56, %v96_v18  ;;  %v483_v18 = vld [vmem:[%s1323_s5] sm:$0xff] }
  0x97   :  { %v175_v63 = vpop.permute.xlu0 %174  ;;  %v808_v2 = vadd.f32 -1.0, %v973_v62  ;;  %927 = vmatprep.mubr.msk.f32.mxu1 %vm305_vm0, %v483_v18 }
  0x98   :  { %v191_v1 = vmul.f32 %v1183_v45, %v175_v63  ;;  %v167_v4 = vpop.permute.xlu1 %166 }
  0x99   :  { %v189_v7 = vmul.f32 %v1183_v45, %v167_v4  ;;  %v240_v8 = vmul.f32 1.6732632, %v808_v2 }
  0x9a   :  { %v199_v6 = vadd.f32 %v191_v1, %v147_v0 }
  0x9b   :  { %v171_v10 = vpop.permute.xlu0 %170  ;;  %v197_v12 = vadd.f32 %v189_v7, %v145_v5  ;;  %v248_v14 = vsel %vm208_vm1, %v200_v50, %v240_v8 }
  0x9c   :  { %v221_v11 = vmul.f32 1.442695, %v199_v6  ;;  %v190_v13 = vmul.f32 %v1183_v45, %v171_v10  ;;  %883 = vmatprep.subr.mxu0 %v248_v14  ;;  %vm207_vm2 = vcmp.gt.f32.partialorder %v199_v6, 0.0 }
  0x9d   :  { %v217_v15 = vmul.f32 1.442695, %v197_v12  ;;  %v62_v17 = vpop.permute.xlu1 %61  ;;  %884 = vmatpush3.msra.mxu0 %v248_v14  ;;  %vm205_vm4 = vcmp.gt.f32.partialorder %v197_v12, 0.0  ;;  %v253_v14 = vld [vmem:[%s1320_s3 + $0x20] sm:$0xff] }
  0x9e   :  { %974 = vpow2.f32 %v221_v11  ;;  %v198_v16 = vadd.f32 %v190_v13, %v146_v9  ;;  %v95_v25 = vmul.f32 %v1180_v40, %v62_v17  ;;  %v250_v11 = vld [vmem:[%s1320_s3 + $0x8] sm:$0xff]  ;;  %v252_v13 = vld [vmem:[%s1320_s3 + $0x18] sm:$0xff] }
  0x9f   :  { %976 = vpow2.f32 %v217_v15  ;;  %v159_v23 = vpop.permute.xlu0 %158  ;;  %v254_v15 = vld [vmem:[%s1320_s3 + $0x28] sm:$0xff]  ;;  %v256_v17 = vld [vmem:[%s1320_s3 + $0x38] sm:$0xff] }
  0xa0   :  { %v219_v19 = vmul.f32 1.442695, %v198_v16  ;;  %v187_v28 = vmul.f32 %v1183_v45, %v159_v23  ;;  %vm206_vm3 = vcmp.gt.f32.partialorder %v198_v16, 0.0 }
  0xa2   :  { %978 = vpow2.f32 %v219_v19  ;;  %v163_v20 = vpop.permute.xlu1 %162 }
  0xa3   :  { %v188_v22 = vmul.f32 %v1183_v45, %v163_v20  ;;  %v155_v32 = vpop.permute.xlu0 %154 }
  0xa4   :  { %v186_v46 = vmul.f32 %v1183_v45, %v155_v32 }
  0xa5   :  { %v196_v24 = vadd.f32 %v188_v22, %v144_v21 }
  0xa7   :  { %v215_v26 = vmul.f32 1.442695, %v196_v24  ;;  %v114_v27 = vpop.permute.xlu1 %113  ;;  %v151_v48 = vpop.permute.xlu0 %150  ;;  %vm204_vm5 = vcmp.gt.f32.partialorder %v196_v24, 0.0 }
  0xa8   :  { %v143_v29 = vadd.f32 %v114_v27, %v95_v25  ;;  %v185_v55 = vmul.f32 %v1183_v45, %v151_v48 }
  0xa9   :  { %980 = vpow2.f32 %v215_v26 }
  0xaa   :  { %v195_v31 = vadd.f32 %v187_v28, %v143_v29 }
  0xab   :  { %v975_v30 = vpop.eup %974  ;;  %v52_v33 = vpop.permute.xlu1 %51 }
  0xac   :  { %v807_v34 = vadd.f32 -1.0, %v975_v30  ;;  %v977_v35 = vpop.eup %976  ;;  %v213_v36 = vmul.f32 1.442695, %v195_v31  ;;  %v93_v51 = vmul.f32 %v1180_v40, %v52_v33  ;;  %vm203_vm6 = vcmp.gt.f32.partialorder %v195_v31, 0.0  ;;  %v298_v22 = vpop.permute.xlu0 %297 }
  0xad   :  { %v805_v38 = vadd.f32 -1.0, %v977_v35 }
  0xae   :  { %v239_v37 = vmul.f32 1.6732632, %v807_v34  ;;  %982 = vpow2.f32 %v213_v36 }
  0xaf   :  { %v979_v39 = vpop.eup %978  ;;  %v109_v42 = vpop.permute.xlu1 %108  ;;  %v237_v50 = vmul.f32 1.6732632, %v805_v38 }
  0xb0   :  { %v247_v43 = vsel %vm207_vm2, %v199_v6, %v239_v37  ;;  %v806_v44 = vadd.f32 -1.0, %v979_v39  ;;  %v142_v47 = vadd.f32 %v109_v42, %v94_v41  ;;  %v283_v27 = vpop.permute.xlu0 %282  ;;  %vm1023_vm2 = vmmov 0  }
  0xb1   :  { %885 = vmatprep.subr.mxu0 %v247_v43  ;;  %v245_v58 = vsel %vm205_vm4, %v197_v12, %v237_v50  ;;  %v251_v12 = vld [vmem:[%s1320_s3 + $0x10] sm:$0xff] }
  0xb2   :  { %886 = vmatpush3.msra.mxu0 %v247_v43  ;;  %v238_v49 = vmul.f32 1.6732632, %v806_v44  ;;  %v194_v52 = vadd.f32 %v186_v46, %v142_v47 }
  0xb3   :  { %v104_v53 = vpop.permute.xlu1 %103 }
  0xb4   :  { %v246_v54 = vsel %vm206_vm3, %v198_v16, %v238_v49  ;;  %v211_v56 = vmul.f32 1.442695, %v194_v52  ;;  %v141_v57 = vadd.f32 %v104_v53, %v93_v51  ;;  %vm202_vm7 = vcmp.gt.f32.partialorder %v194_v52, 0.0  ;;  %v255_v16 = vld [vmem:[%s1320_s3 + $0x30] sm:$0xff]  ;;  %v273_v39 = vpop.permute.xlu0 %272 }
  0xb5   :  { %887 = vmatprep.subr.mxu0 %v246_v54 }
  0xb6   :  { %888 = vmatpush3.msra.mxu0 %v246_v54  ;;  %v981_v59 = vpop.eup %980  ;;  %984 = vpow2.f32 %v211_v56  ;;  %v193_v60 = vadd.f32 %v185_v55, %v141_v57 }
  0xb7   :  { %889 = vmatprep.subr.mxu0 %v245_v58  ;;  %v804_v61 = vadd.f32 -1.0, %v981_v59  ;;  %v303_v19 = vpop.permute.xlu1 %302 }
  0xb8   :  { %890 = vmatpush3.msra.mxu0 %v245_v58  ;;  %v209_v62 = vmul.f32 1.442695, %v193_v60  ;;  %vm201_vm8 = vcmp.gt.f32.partialorder %v193_v60, 0.0 }
  0xb9   :  { %v236_v40 = vmul.f32 1.6732632, %v804_v61 }
  0xba   :  { %986 = vpow2.f32 %v209_v62 }
  0xbb   :  { %v983_v63 = vpop.eup %982  ;;  %v244_v0 = vsel %vm204_vm5, %v196_v24, %v236_v40  ;;  %v293_v20 = vpop.permute.xlu1 %292 }
  0xbc   :  { %891 = vmatprep.subr.mxu0 %v244_v0  ;;  %v803_v45 = vadd.f32 -1.0, %v983_v63 }
  0xbd   :  { %892 = vmatpush3.msra.mxu0 %v244_v0 }
  0xbe   :  { %v235_v1 = vmul.f32 1.6732632, %v803_v45 }
  0xbf   :  { %v288_v24 = vpop.permute.xlu1 %287 }
  0xc0   :  { %v243_v2 = vsel %vm203_vm6, %v195_v31, %v235_v1 }
  0xc1   :  { %893 = vmatprep.subr.mxu0 %v243_v2 }
  0xc2   :  { %894 = vmatpush3.msra.mxu0 %v243_v2 }
  0xc3   :  { %v985_v3 = vpop.eup %984  ;;  %v278_v30 = vpop.permute.xlu1 %277 }
  0xc4   :  { %v802_v4 = vadd.f32 -1.0, %v985_v3 }
  0xc6   :  { %v234_v5 = vmul.f32 1.6732632, %v802_v4 }
  0xc7   :  { %v987_v6 = vpop.eup %986  ;;  %v268_v47 = vpop.permute.xlu1 %267 }
  0xc8   :  { %v242_v7 = vsel %vm202_vm7, %v194_v52, %v234_v5  ;;  %v801_v8 = vadd.f32 -1.0, %v987_v6 }
  0xc9   :  { %895 = vmatprep.subr.mxu0 %v242_v7 }
  0xca   :  { %896 = vmatpush3.msra.mxu0 %v242_v7  ;;  %v233_v9 = vmul.f32 1.6732632, %v801_v8 }
  0xcc   :  { %v241_v10 = vsel %vm201_vm8, %v193_v60, %v233_v9 }
  0xcd   :  { %897 = vmatprep.subr.mxu0 %v241_v10 }
  0xce   :  { %898 = vmatpush3.msra.mxu0 %v241_v10 }
  0xcf   :  { %900 = vmatmul.mubr.msk.f32.vlgmr.msra.gmra.mxu0 %vm305_vm0, %v250_v11 }
  0xd0   :  { %902 = vmatprep.mubr.msk.f32.mxu0 %vm305_vm0, %v251_v12 }
  0xd3   :  { %903 = vmatmul.mubr.msk.f32.gmra.mxu0 %vm305_vm0, %v252_v13 }
  0xd4   :  { %905 = vmatprep.mubr.msk.f32.mxu0 %vm305_vm0, %v253_v14 }
  0xd7   :  { %906 = vmatmul.mubr.msk.f32.gmra.mxu0 %vm305_vm0, %v254_v15 }
  0xd8   :  { %908 = vmatprep.mubr.msk.f32.mxu0 %vm305_vm0, %v255_v16 }
  0xdb   :  { %909 = vmatmul.mubr.msk.f32.gmra.mxu0 %vm305_vm0, %v256_v17 }
 0x18f   :  { %v901_v21 = vpop.f32.mrf.mxu0 }
 0x190   :  { %v1237_v43 = vadd.f32 %v901_v21, %v273_v39  ;;  %v486_v21 = vld [vmem:[%s1323_s5 + $0x18] sm:$0xff] }
 0x191   :  { %v396_v23 = vpop.f32.mrf.mxu0 }
 0x192   :  { %v1239_v48 = vadd.f32 %v396_v23, %v268_v47  ;;  %v445_v51 = vmul.f32 1.442695, %v1237_v43  ;;  %vm436_vm15 = vcmp.gt.f32.partialorder %v1237_v43, 0.0  ;;  %v488_v23 = vld [vmem:[%s1323_s5 + $0x28] sm:$0xff] }
 0x193   :  { %v904_v25 = vpop.f32.mrf.mxu0 }
 0x194   :  { %v1232_v31 = vadd.f32 %v904_v25, %v283_v27  ;;  %v443_v52 = vmul.f32 1.442695, %v1239_v48  ;;  %vm435_vm1 = vcmp.gt.f32.partialorder %v1239_v48, 0.0  ;;  %v490_v25 = vld [vmem:[%s1323_s5 + $0x38] sm:$0xff]  ;;  %v537_v27 = vpop.permute.xlu0 %536 }
 0x195   :  { %v406_v26 = vpop.f32.mrf.mxu0 }
 0x196   :  { %v1234_v36 = vadd.f32 %v406_v26, %v278_v30  ;;  %v449_v41 = vmul.f32 1.442695, %v1232_v31  ;;  %vm438_vm13 = vcmp.gt.f32.partialorder %v1232_v31, 0.0  ;;  %v1022_v26 = vmov 0.0  }
 0x197   :  { %v907_v28 = vpop.f32.mrf.mxu0  ;;  %939 = vmatprep.subr.mxu0 %v1022_v26  ;;  %955 = vmatprep.mubr.msk.f32.mxu0 %vm1023_vm2, %v1022_v26 }
 0x198   :  { %v422_v29 = vadd.f32 %v907_v28, %v293_v20  ;;  %v447_v49 = vmul.f32 1.442695, %v1234_v36  ;;  %vm437_vm14 = vcmp.gt.f32.partialorder %v1234_v36, 0.0  ;;  %v485_v20 = vld [vmem:[%s1323_s5 + $0x10] sm:$0xff]  ;;  %v532_v28 = vpop.permute.xlu1 %531  ;;  %v527_v30 = vpop.permute.xlu0 %526 }
 0x199   :  { %v416_v32 = vpop.f32.mrf.mxu0 }
 0x19a   :  { %v453_v33 = vmul.f32 1.442695, %v422_v29  ;;  %v417_v34 = vadd.f32 %v416_v32, %v288_v24  ;;  %vm440_vm11 = vcmp.gt.f32.partialorder %v422_v29, 0.0  ;;  %v489_v24 = vld [vmem:[%s1323_s5 + $0x30] sm:$0xff] }
 0x19b   :  { %v910_v35 = vpop.f32.mrf.mxu0 }
 0x19c   :  { %v451_v37 = vmul.f32 1.442695, %v417_v34  ;;  %v432_v38 = vadd.f32 %v910_v35, %v303_v19  ;;  %988 = vpow2.f32 %v453_v33  ;;  %vm439_vm12 = vcmp.gt.f32.partialorder %v417_v34, 0.0  ;;  %v484_v19 = vld [vmem:[%s1323_s5 + $0x8] sm:$0xff]  ;;  %v522_v32 = vpop.permute.xlu1 %521  ;;  %v517_v35 = vpop.permute.xlu0 %516 }
 0x19d   :  { %v426_v42 = vpop.f32.mrf.mxu0 }
 0x19e   :  { %v457_v44 = vmul.f32 1.442695, %v432_v38  ;;  %v427_v46 = vadd.f32 %v426_v42, %v298_v22  ;;  %990 = vpow2.f32 %v451_v37  ;;  %vm442_vm9 = vcmp.gt.f32.partialorder %v432_v38, 0.0  ;;  %v487_v22 = vld [vmem:[%s1323_s5 + $0x20] sm:$0xff] }
 0x1a0   :  { %992 = vpow2.f32 %v457_v44  ;;  %v455_v50 = vmul.f32 1.442695, %v427_v46  ;;  %vm441_vm10 = vcmp.gt.f32.partialorder %v427_v46, 0.0 }
 0x1a1   :  { %994 = vpow2.f32 %v449_v41 }
 0x1a2   :  { %996 = vpow2.f32 %v455_v50 }
 0x1a3   :  { %998 = vpow2.f32 %v447_v49  ;;  %v507_v49 = vpop.permute.xlu0 %506 }
 0x1a4   :  { %1000 = vpow2.f32 %v445_v51 }
 0x1a5   :  { %1002 = vpow2.f32 %v443_v52 }
 0x1a9   :  { %v989_v53 = vpop.eup %988 }
 0x1aa   :  { %v822_v58 = vadd.f32 -1.0, %v989_v53 }
 0x1ab   :  { %v991_v54 = vpop.eup %990 }
 0x1ac   :  { %v821_v62 = vadd.f32 -1.0, %v991_v54  ;;  %v472_v45 = vmul.f32 1.6732632, %v822_v58 }
 0x1ad   :  { %v993_v55 = vpop.eup %992 }
 0x1ae   :  { %v995_v56 = vpop.eup %994  ;;  %v824_v57 = vadd.f32 -1.0, %v993_v55  ;;  %v471_v4 = vmul.f32 1.6732632, %v821_v62  ;;  %v480_v7 = vsel %vm440_vm11, %v422_v29, %v472_v45 }
 0x1af   :  { %v997_v59 = vpop.eup %996  ;;  %v820_v1 = vadd.f32 -1.0, %v995_v56 }
 0x1b0   :  { %v474_v60 = vmul.f32 1.6732632, %v824_v57  ;;  %v823_v61 = vadd.f32 -1.0, %v997_v59  ;;  %v999_v40 = vpop.eup %998  ;;  %v479_v10 = vsel %vm439_vm12, %v417_v34, %v471_v4 }
 0x1b1   :  { %v1001_v2 = vpop.eup %1000  ;;  %v819_v5 = vadd.f32 -1.0, %v999_v40  ;;  %v470_v8 = vmul.f32 1.6732632, %v820_v1 }
 0x1b2   :  { %v482_v63 = vsel %vm442_vm9, %v432_v38, %v474_v60  ;;  %v473_v0 = vmul.f32 1.6732632, %v823_v61  ;;  %v1003_v6 = vpop.eup %1002  ;;  %v818_v9 = vadd.f32 -1.0, %v1001_v2  ;;  %v512_v38 = vpop.permute.xlu1 %511 }
 0x1b3   :  { %911 = vmatprep.subr.mxu1 %v482_v63  ;;  %v469_v11 = vmul.f32 1.6732632, %v819_v5  ;;  %v817_v12 = vadd.f32 -1.0, %v1003_v6  ;;  %v478_v13 = vsel %vm438_vm13, %v1232_v31, %v470_v8 }
 0x1b4   :  { %912 = vmatpush3.msra.mxu1 %v482_v63  ;;  %v481_v3 = vsel %vm441_vm10, %v427_v46, %v473_v0  ;;  %v468_v14 = vmul.f32 1.6732632, %v818_v9 }
 0x1b5   :  { %913 = vmatprep.subr.mxu1 %v481_v3  ;;  %v477_v15 = vsel %vm437_vm14, %v1234_v36, %v469_v11  ;;  %v467_v16 = vmul.f32 1.6732632, %v817_v12 }
 0x1b6   :  { %914 = vmatpush3.msra.mxu1 %v481_v3  ;;  %v476_v17 = vsel %vm436_vm15, %v1237_v43, %v468_v14  ;;  %v502_v55 = vpop.permute.xlu1 %501 }
 0x1b7   :  { %915 = vmatprep.subr.mxu1 %v480_v7  ;;  %v475_v18 = vsel %vm435_vm1, %v1239_v48, %v467_v16 }
 0x1b8   :  { %916 = vmatpush3.msra.mxu1 %v480_v7 }
 0x1b9   :  { %917 = vmatprep.subr.mxu1 %v479_v10 }
 0x1ba   :  { %918 = vmatpush3.msra.mxu1 %v479_v10 }
 0x1bb   :  { %919 = vmatprep.subr.mxu1 %v478_v13 }
 0x1bc   :  { %920 = vmatpush3.msra.mxu1 %v478_v13 }
 0x1bd   :  { %921 = vmatprep.subr.mxu1 %v477_v15 }
 0x1be   :  { %922 = vmatpush3.msra.mxu1 %v477_v15 }
 0x1bf   :  { %923 = vmatprep.subr.mxu1 %v476_v17 }
 0x1c0   :  { %924 = vmatpush3.msra.mxu1 %v476_v17 }
 0x1c1   :  { %925 = vmatprep.subr.mxu1 %v475_v18 }
 0x1c2   :  { %926 = vmatpush3.msra.mxu1 %v475_v18 }
 0x1c3   :  { %928 = vmatmul.mubr.msk.f32.vlgmr.msra.gmra.mxu1 %vm305_vm0, %v484_v19 }
 0x1c4   :  { %930 = vmatprep.mubr.msk.f32.mxu1 %vm305_vm0, %v485_v20 }
 0x1c7   :  { %931 = vmatmul.mubr.msk.f32.gmra.mxu1 %vm305_vm0, %v486_v21 }
 0x1c8   :  { %933 = vmatprep.mubr.msk.f32.mxu1 %vm305_vm0, %v487_v22 }
 0x1cb   :  { %934 = vmatmul.mubr.msk.f32.gmra.mxu1 %vm305_vm0, %v488_v23 }
 0x1cc   :  { %936 = vmatprep.mubr.msk.f32.mxu1 %vm305_vm0, %v489_v24 }
 0x1cf   :  { %937 = vmatmul.mubr.msk.f32.gmra.mxu1 %vm305_vm0, %v490_v25 }
 0x283   :  { %v929_v29 = vpop.f32.mrf.mxu1 }
 0x284   :  { %v1287_v52 = vadd.f32 %v929_v29, %v507_v49  ;;  %v721_v29 = vpop.permute.xlu0 %720 }
 0x285   :  { %v629_v31 = vpop.f32.mrf.mxu1 }
 0x286   :  { %v1289_v56 = vadd.f32 %v629_v31, %v502_v55  ;;  %v678_v59 = vmul.f32 1.442695, %v1287_v52  ;;  %vm669_vm9 = vcmp.gt.f32.partialorder %v1287_v52, 0.0 }
 0x287   :  { %v932_v33 = vpop.f32.mrf.mxu1 }
 0x288   :  { %v1282_v39 = vadd.f32 %v932_v33, %v517_v35  ;;  %v676_v60 = vmul.f32 1.442695, %v1289_v56  ;;  %vm668_vm10 = vcmp.gt.f32.partialorder %v1289_v56, 0.0 }
 0x289   :  { %v639_v34 = vpop.f32.mrf.mxu1 }
 0x28a   :  { %v1284_v46 = vadd.f32 %v639_v34, %v512_v38  ;;  %v682_v50 = vmul.f32 1.442695, %v1282_v39  ;;  %vm671_vm7 = vcmp.gt.f32.partialorder %v1282_v39, 0.0 }
 0x28b   :  { %v935_v36 = vpop.f32.mrf.mxu1 }
 0x28c   :  { %v655_v37 = vadd.f32 %v935_v36, %v527_v30  ;;  %v680_v57 = vmul.f32 1.442695, %v1284_v46  ;;  %vm670_vm8 = vcmp.gt.f32.partialorder %v1284_v46, 0.0 }
 0x28d   :  { %v649_v41 = vpop.f32.mrf.mxu1 }
 0x28e   :  { %v686_v42 = vmul.f32 1.442695, %v655_v37  ;;  %v650_v43 = vadd.f32 %v649_v41, %v522_v32  ;;  %vm673_vm5 = vcmp.gt.f32.partialorder %v655_v37, 0.0 }
 0x28f   :  { %v938_v44 = vpop.f32.mrf.mxu1 }
 0x290   :  { %v684_v47 = vmul.f32 1.442695, %v650_v43  ;;  %v665_v48 = vadd.f32 %v938_v44, %v537_v27  ;;  %1004 = vpow2.f32 %v686_v42  ;;  %vm672_vm6 = vcmp.gt.f32.partialorder %v650_v43, 0.0  ;;  %v716_v27 = vld [vmem:[%s1324_s7] sm:$0x3] }
 0x291   :  { %v659_v51 = vpop.f32.mrf.mxu1 }
 0x292   :  { %v690_v53 = vmul.f32 1.442695, %v665_v48  ;;  %v660_v54 = vadd.f32 %v659_v51, %v532_v28  ;;  %1006 = vpow2.f32 %v684_v47  ;;  %vm675_vm3 = vcmp.gt.f32.partialorder %v665_v48, 0.0 }
 0x294   :  { %1008 = vpow2.f32 %v690_v53  ;;  %v688_v58 = vmul.f32 1.442695, %v660_v54  ;;  %vm674_vm4 = vcmp.gt.f32.partialorder %v660_v54, 0.0 }
 0x295   :  { %1010 = vpow2.f32 %v682_v50 }
 0x296   :  { %1012 = vpow2.f32 %v688_v58 }
 0x297   :  { %1014 = vpow2.f32 %v680_v57 }
 0x298   :  { %1016 = vpow2.f32 %v678_v59 }
 0x299   :  { %1018 = vpow2.f32 %v676_v60 }
 0x29d   :  { %v1005_v61 = vpop.eup %1004 }
 0x29e   :  { %v838_v45 = vadd.f32 -1.0, %v1005_v61 }
 0x29f   :  { %v1007_v62 = vpop.eup %1006 }
 0x2a0   :  { %v837_v4 = vadd.f32 -1.0, %v1007_v62  ;;  %v705_v8 = vmul.f32 1.6732632, %v838_v45 }
 0x2a1   :  { %v1009_v40 = vpop.eup %1008 }
 0x2a2   :  { %v1011_v63 = vpop.eup %1010  ;;  %v840_v0 = vadd.f32 -1.0, %v1009_v40  ;;  %v704_v12 = vmul.f32 1.6732632, %v837_v4  ;;  %v713_v15 = vsel %vm673_vm5, %v655_v37, %v705_v8 }
 0x2a3   :  { %v1013_v1 = vpop.eup %1012  ;;  %v836_v9 = vadd.f32 -1.0, %v1011_v63 }
 0x2a4   :  { %v707_v2 = vmul.f32 1.6732632, %v840_v0  ;;  %v839_v3 = vadd.f32 -1.0, %v1013_v1  ;;  %v1015_v5 = vpop.eup %1014  ;;  %v712_v18 = vsel %vm672_vm6, %v650_v43, %v704_v12 }
 0x2a5   :  { %v1017_v10 = vpop.eup %1016  ;;  %v835_v13 = vadd.f32 -1.0, %v1015_v5  ;;  %v703_v16 = vmul.f32 1.6732632, %v836_v9 }
 0x2a6   :  { %v715_v6 = vsel %vm675_vm3, %v665_v48, %v707_v2  ;;  %v706_v7 = vmul.f32 1.6732632, %v839_v3  ;;  %v1019_v14 = vpop.eup %1018  ;;  %v834_v17 = vadd.f32 -1.0, %v1017_v10 }
 0x2a7   :  { %940 = vmatpush3.msra.mxu0 %v715_v6  ;;  %v702_v19 = vmul.f32 1.6732632, %v835_v13  ;;  %v833_v20 = vadd.f32 -1.0, %v1019_v14  ;;  %v711_v21 = vsel %vm671_vm7, %v1282_v39, %v703_v16 }
 0x2a8   :  { %941 = vmatprep.subr.mxu0 %v1022_v26  ;;  %v714_v11 = vsel %vm674_vm4, %v660_v54, %v706_v7  ;;  %v701_v22 = vmul.f32 1.6732632, %v834_v17 }
 0x2a9   :  { %942 = vmatpush3.msra.mxu0 %v714_v11  ;;  %v710_v23 = vsel %vm670_vm8, %v1284_v46, %v702_v19  ;;  %v700_v24 = vmul.f32 1.6732632, %v833_v20 }
 0x2aa   :  { %943 = vmatprep.subr.mxu0 %v1022_v26  ;;  %v709_v25 = vsel %vm669_vm9, %v1287_v52, %v701_v22 }
 0x2ab   :  { %944 = vmatpush3.msra.mxu0 %v713_v15  ;;  %v708_v28 = vsel %vm668_vm10, %v1289_v56, %v700_v24 }
 0x2ac   :  { %945 = vmatprep.subr.mxu0 %v1022_v26 }
 0x2ad   :  { %946 = vmatpush3.msra.mxu0 %v712_v18 }
 0x2ae   :  { %947 = vmatprep.subr.mxu0 %v1022_v26 }
 0x2af   :  { %948 = vmatpush3.msra.mxu0 %v711_v21 }
 0x2b0   :  { %949 = vmatprep.subr.mxu0 %v1022_v26 }
 0x2b1   :  { %950 = vmatpush3.msra.mxu0 %v710_v23 }
 0x2b2   :  { %951 = vmatprep.subr.mxu0 %v1022_v26 }
 0x2b3   :  { %952 = vmatpush3.msra.mxu0 %v709_v25 }
 0x2b4   :  { %953 = vmatprep.subr.mxu0 %v1022_v26 }
 0x2b5   :  { %954 = vmatpush3.msra.mxu0 %v708_v28 }
 0x2b6   :  { %956 = vmatmul.mubr.msk.f32.vlgmr.msra.gmra.mxu0 %vm305_vm0, %v716_v27 }
 0x376   :  { %v792_v30 = vpop.f32.mrf.mxu0 }
 0x377   :  { %v793_v31 = vadd.f32 %v792_v30, %v721_v29 }
 0x378   :  { %v957_v32 = vpop.f32.mrf.mxu0 }
 0x379   :  { %796 = vst [vmem:[%s1325_s9] sm:$0x3] %v793_v31 }

</bundles_post_ra>
